<compile_context>
chip_gen: v5e
topology: v5e:2x2
jax: 0.10.0
libtpu: 0.0.40
codegen_flags: <defaults>
</compile_context>

<pallas_src>
import functools
import math

import jax
import jax.numpy as jnp
from jax.experimental import pallas as pl
from jax.experimental.pallas import tpu as pltpu


# ----------------------------------------------------------------------------
# Fused (matmul + bias + optional ReLU) Pallas kernel, lane-dense orientation.
#   w_ref: (N, K)   p_ref: (K, TM)   b_ref: (N, 1)   o_ref: (N, TM)
# ----------------------------------------------------------------------------
def _matmul_bias_kernel(w_ref, p_ref, b_ref, o_ref, *, apply_relu):
    y = jnp.dot(w_ref[...], p_ref[...], preferred_element_type=jnp.float32)
    y = y + b_ref[...]                      # (N,1) broadcast over lanes, f32
    if apply_relu:
        y = jnp.maximum(y, 0.0)
    o_ref[...] = y.astype(o_ref.dtype)


def pallas_matmul_bias(w, p, b, *, apply_relu, out_dtype, tm=512):
    """Compute (relu)(w @ p + b) with output (N, M); tiled over M."""
    N, K = w.shape
    K2, M = p.shape
    assert K == K2, (K, K2)
    assert b.shape == (N, 1), b.shape

    if M <= tm:
        tm_eff, grid_m = M, 1          # full-M block (always legal: equals full dim)
    else:
        tm_eff, grid_m = tm, pl.cdiv(M, tm)   # tm multiple of 128 -> legal tiles

    flops = 2 * N * K * M
    bytes_accessed = (
        N * K * w.dtype.itemsize
        + K * M * p.dtype.itemsize
        + N * 4
        + N * M * jnp.dtype(out_dtype).itemsize
    )

    return pl.pallas_call(
        functools.partial(_matmul_bias_kernel, apply_relu=apply_relu),
        out_shape=jax.ShapeDtypeStruct((N, M), out_dtype),
        grid=(grid_m,),
        in_specs=[
            pl.BlockSpec((N, K), lambda i: (0, 0)),        # weights: resident
            pl.BlockSpec((K, tm_eff), lambda i: (0, i)),   # patches: streamed over M
            pl.BlockSpec((N, 1), lambda i: (0, 0)),        # bias: resident
        ],
        out_specs=pl.BlockSpec((N, tm_eff), lambda i: (0, i)),
        compiler_params=pltpu.CompilerParams(
            dimension_semantics=("parallel",)),            # shard M over TCs (v7x)
        cost_estimate=pl.CostEstimate(
            flops=flops, transcendentals=0, bytes_accessed=bytes_accessed),
    )(w, p, b)


# ----------------------------------------------------------------------------
# Conv2d as channel-first im2col (glue) + fused Pallas matmul (hot path)
# ----------------------------------------------------------------------------
def _im2col_cf(x, k, s, oh, ow):
    """x: (C, B, H, W) -> patches (C*k*k, B*oh*ow); row order (c, kh, kw)."""
    C, B, _, _ = x.shape
    kh_stack = []
    for i in range(k):
        kw_stack = []
        for j in range(k):
            kw_stack.append(x[:, :, i::s, j::s][:, :, :oh, :ow])  # (C, B, oh, ow)
        kh_stack.append(jnp.stack(kw_stack, axis=1))              # (C, k, B, oh, ow)
    pat = jnp.stack(kh_stack, axis=1)                             # (C, k, k, B, oh, ow)
    return pat.reshape(C * k * k, B * oh * ow)


def conv_layer(x, wm, b, k, s):
    """x: (C, B, H, W) bf16, wm: (OC, C*k*k) bf16, b: (OC, 1) f32 -> (OC, B, OH, OW)."""
    C, B, H, W = x.shape
    oh = (H - k) // s + 1
    ow = (W - k) // s + 1
    patches = _im2col_cf(x, k, s, oh, ow)                         # (C*k*k, B*oh*ow)
    y = pallas_matmul_bias(wm, patches, b, apply_relu=True,
                           out_dtype=jnp.bfloat16)                # (OC, B*oh*ow)
    return y.reshape(-1, B, oh, ow)


# ----------------------------------------------------------------------------
# Encoder: parameters + forward
# ----------------------------------------------------------------------------
def _uniform(key, shape, bound):
    return jax.random.uniform(key, shape, jnp.float32, -bound, bound)


def _conv_out(h, k, s):
    return (h - k) // s + 1


def init_encoder_params(key, obs_shape, latent_dim):
    """PyTorch-layout params, default-style U(-1/sqrt(fan_in), +...) init."""
    C, H, W = obs_shape
    keys = jax.random.split(key, 8)

    def make(kw, kb, oc, ic, ksz):
        bound = 1.0 / math.sqrt(ic * ksz * ksz)
        return _uniform(kw, (oc, ic, ksz, ksz), bound), _uniform(kb, (oc,), bound)

    params = {}
    params["w1"], params["b1"] = make(keys[0], keys[1], 32, C, 8)
    params["w2"], params["b2"] = make(keys[2], keys[3], 64, 32, 4)
    params["w3"], params["b3"] = make(keys[4], keys[5], 64, 64, 3)

    h3 = _conv_out(_conv_out(_conv_out(H, 8, 4), 4, 2), 3, 1)
    w3 = _conv_out(_conv_out(_conv_out(W, 8, 4), 4, 2), 3, 1)
    n_flatten = 64 * h3 * w3
    bound = 1.0 / math.sqrt(n_flatten)
    params["wl"] = _uniform(keys[6], (latent_dim, n_flatten), bound)  # (out, in)
    params["bl"] = _uniform(keys[7], (latent_dim,), bound)
    return params


def prepare_kernel_params(params):
    """One-time (hoisted out of forward) conversion to kernel-ready layouts/dtypes."""
    def conv_w(w):
        return w.reshape(w.shape[0], -1).astype(jnp.bfloat16)   # (OC, IC*K*K)

    def col_b(b):
        return b.reshape(-1, 1).astype(jnp.float32)             # (OC, 1)

    return {
        "w1": conv_w(params["w1"]), "b1": col_b(params["b1"]),
        "w2": conv_w(params["w2"]), "b2": col_b(params["b2"]),
        "w3": conv_w(params["w3"]), "b3": col_b(params["b3"]),
        # channel-first flatten order == PyTorch (c,h,w) order -> use wl directly.
        "wl": params["wl"].astype(jnp.bfloat16),                # (latent, n_flatten)
        "bl": col_b(params["bl"]),                              # (latent, 1)
    }


def encoder_forward(kparams, obs):
    """obs: (B, C, H, W) float32 -> (B, latent_dim) float32."""
    # Single cheap layout change at the boundary; no transposes between layers.
    x = jnp.transpose(obs, (1, 0, 2, 3)).astype(jnp.bfloat16)   # (C, B, H, W)
    x = conv_layer(x, kparams["w1"], kparams["b1"], k=8, s=4)
    x = conv_layer(x, kparams["w2"], kparams["b2"], k=4, s=2)
    x = conv_layer(x, kparams["w3"], kparams["b3"], k=3, s=1)   # (64, B, H3, W3)
    C3, B, H3, W3 = x.shape
    # Flatten in PyTorch's (c, h, w) order, features-major so the linear is lane-ready.
    flat_t = jnp.transpose(x, (0, 2, 3, 1)).reshape(C3 * H3 * W3, B)  # (n_flatten, B)
    out_t = pallas_matmul_bias(kparams["wl"], flat_t, kparams["bl"],
                               apply_relu=False, out_dtype=jnp.float32)  # (latent, B)
    return out_t.T                                               # (B, latent)


# Pure-JAX reference (no Pallas) for the correctness check.
def _ref_forward(params, obs):
    def conv(x, w, b, s):
        y = jax.lax.conv_general_dilated(
            x, w, (s, s), "VALID", dimension_numbers=("NCHW", "OIHW", "NCHW"),
            precision=jax.lax.Precision.HIGHEST)
        return jax.nn.relu(y + b[None, :, None, None])

    x = conv(obs, params["w1"], params["b1"], 4)
    x = conv(x, params["w2"], params["b2"], 2)
    x = conv(x, params["w3"], params["b3"], 1)
    flat = x.reshape(x.shape[0], -1)
    return flat @ params["wl"].T + params["bl"]


if __name__ == "__main__":
    # Shapes consistent with the conv stack (H, W >= 36 survives 8/4 -> 4/2 -> 3/1).
    obs_shape = (4, 36, 36)   # (C, H, W)
    batch = 2
    latent_dim = 32
    # action_dim is unused by Encoder.forward.

    key = jax.random.PRNGKey(0)
    pkey, okey = jax.random.split(key)
    params = init_encoder_params(pkey, obs_shape, latent_dim)
    kparams = prepare_kernel_params(params)   # hoisted: no per-call weight reshapes/.T
    obs = jax.random.normal(okey, (batch,) + obs_shape, dtype=jnp.float32)

    out = jax.jit(encoder_forward)(kparams, obs)
    out = jax.block_until_ready(out)
    assert out.shape == (batch, latent_dim), out.shape

    ref = jax.block_until_ready(jax.jit(_ref_forward)(params, obs))
    max_err = float(jnp.max(jnp.abs(out - ref)))
    assert jnp.allclose(out, ref, rtol=2e-2, atol=2e-2), max_err

    print("KERNEL_OK")
</pallas_src>

<mosaic_0001>
module attributes {stable_mosaic.version = 11 : i64} {
  func.func @_matmul_bias_kernel(%arg0: i32, %arg1: memref<32x256xbf16, #tpu.memory_space<vmem>>, %arg2: memref<256x128xbf16, #tpu.memory_space<vmem>>, %arg3: memref<32x1xf32, #tpu.memory_space<vmem>>, %arg4: memref<32x128xbf16, #tpu.memory_space<vmem>>) attributes {dimension_semantics = [#tpu.dimension_semantics<parallel>], iteration_bounds = array<i64: 1>, scalar_prefetch = 0 : i64, scratch_operands = 0 : i64, tpu.core_type = #tpu.core_type<tc>, window_params = [{pipeline_mode = #tpu.pipeline_mode<synchronous>, transform_indices = @transform_0, window_bounds = array<i64: 32, 256>}, {transform_indices = @transform_1, window_bounds = array<i64: 256, 128>}, {pipeline_mode = #tpu.pipeline_mode<synchronous>, transform_indices = @transform_2, window_bounds = array<i64: 32, 1>}, {transform_indices = @transform_3, window_bounds = array<i64: 32, 128>}]} {
    %c0 = arith.constant 0 : index
    %c0_0 = arith.constant 0 : index
    %0 = vector.load %arg1[%c0, %c0_0] : memref<32x256xbf16, #tpu.memory_space<vmem>>, vector<32x256xbf16>
    %c0_1 = arith.constant 0 : index
    %c0_2 = arith.constant 0 : index
    %1 = vector.load %arg2[%c0_1, %c0_2] : memref<256x128xbf16, #tpu.memory_space<vmem>>, vector<256x128xbf16>
    %cst = arith.constant dense<0.000000e+00> : vector<32x128xf32>
    %2 = tpu.matmul %0, %1, %cst {dimension_numbers = #tpu.dot_dimension_numbers<[1], [0], [0], [1], [0, 0, 1, 1], [], []>} : vector<32x256xbf16>, vector<256x128xbf16>, vector<32x128xf32> -> vector<32x128xf32>
    %c0_3 = arith.constant 0 : index
    %c0_4 = arith.constant 0 : index
    %3 = vector.load %arg3[%c0_3, %c0_4] : memref<32x1xf32, #tpu.memory_space<vmem>>, vector<32x1xf32>
    %4 = vector.broadcast %3 : vector<32x1xf32> to vector<32x128xf32>
    %5 = arith.addf %2, %4 : vector<32x128xf32>
    %cst_5 = arith.constant 0.000000e+00 : f32
    %6 = vector.broadcast %cst_5 : f32 to vector<32x128xf32>
    %7 = arith.maximumf %5, %6 : vector<32x128xf32>
    %8 = arith.truncf %7 : vector<32x128xf32> to vector<32x128xbf16>
    %c0_6 = arith.constant 0 : index
    %c0_7 = arith.constant 0 : index
    %9 = vector.load %arg4[%c0_6, %c0_7] : memref<32x128xbf16, #tpu.memory_space<vmem>>, vector<32x128xbf16>
    tpu.vector_store %arg4[%c0_6, %c0_7], %8 {strides = array<i32>} : memref<32x128xbf16, #tpu.memory_space<vmem>>, vector<32x128xbf16>,
    return
  }
  func.func @transform_0(%arg0: i32) -> (i32, i32) {
    %c0_i32 = arith.constant 0 : i32
    %c0_i32_0 = arith.constant 0 : i32
    %c0_i32_1 = arith.constant 0 : i32
    return %c0_i32, %c0_i32_0 : i32, i32
  }
  func.func @transform_1(%arg0: i32) -> (i32, i32) {
    %c0_i32 = arith.constant 0 : i32
    %c0_i32_0 = arith.constant 0 : i32
    return %c0_i32, %arg0 : i32, i32
  }
  func.func @transform_2(%arg0: i32) -> (i32, i32) {
    %c0_i32 = arith.constant 0 : i32
    %c0_i32_0 = arith.constant 0 : i32
    %c0_i32_1 = arith.constant 0 : i32
    return %c0_i32, %c0_i32_0 : i32, i32
  }
  func.func @transform_3(%arg0: i32) -> (i32, i32) {
    %c0_i32 = arith.constant 0 : i32
    %c0_i32_0 = arith.constant 0 : i32
    return %c0_i32, %arg0 : i32, i32
  }
}

module attributes {stable_mosaic.version = 11 : i64} {
  func.func @_matmul_bias_kernel(%arg0: i32, %arg1: memref<64x512xbf16, #tpu.memory_space<vmem>>, %arg2: memref<512x18xbf16, #tpu.memory_space<vmem>>, %arg3: memref<64x1xf32, #tpu.memory_space<vmem>>, %arg4: memref<64x18xbf16, #tpu.memory_space<vmem>>) attributes {dimension_semantics = [#tpu.dimension_semantics<parallel>], iteration_bounds = array<i64: 1>, scalar_prefetch = 0 : i64, scratch_operands = 0 : i64, tpu.core_type = #tpu.core_type<tc>, window_params = [{pipeline_mode = #tpu.pipeline_mode<synchronous>, transform_indices = @transform_0, window_bounds = array<i64: 64, 512>}, {transform_indices = @transform_1, window_bounds = array<i64: 512, 18>}, {pipeline_mode = #tpu.pipeline_mode<synchronous>, transform_indices = @transform_2, window_bounds = array<i64: 64, 1>}, {transform_indices = @transform_3, window_bounds = array<i64: 64, 18>}]} {
    %c0 = arith.constant 0 : index
    %c0_0 = arith.constant 0 : index
    %0 = vector.load %arg1[%c0, %c0_0] : memref<64x512xbf16, #tpu.memory_space<vmem>>, vector<64x512xbf16>
    %c0_1 = arith.constant 0 : index
    %c0_2 = arith.constant 0 : index
    %1 = vector.load %arg2[%c0_1, %c0_2] : memref<512x18xbf16, #tpu.memory_space<vmem>>, vector<512x18xbf16>
    %cst = arith.constant dense<0.000000e+00> : vector<64x18xf32>
    %2 = tpu.matmul %0, %1, %cst {dimension_numbers = #tpu.dot_dimension_numbers<[1], [0], [0], [1], [0, 0, 1, 1], [], []>} : vector<64x512xbf16>, vector<512x18xbf16>, vector<64x18xf32> -> vector<64x18xf32>
    %c0_3 = arith.constant 0 : index
    %c0_4 = arith.constant 0 : index
    %3 = vector.load %arg3[%c0_3, %c0_4] : memref<64x1xf32, #tpu.memory_space<vmem>>, vector<64x1xf32>
    %4 = vector.broadcast %3 : vector<64x1xf32> to vector<64x18xf32>
    %5 = arith.addf %2, %4 : vector<64x18xf32>
    %cst_5 = arith.constant 0.000000e+00 : f32
    %6 = vector.broadcast %cst_5 : f32 to vector<64x18xf32>
    %7 = arith.maximumf %5, %6 : vector<64x18xf32>
    %8 = arith.truncf %7 : vector<64x18xf32> to vector<64x18xbf16>
    %c0_6 = arith.constant 0 : index
    %c0_7 = arith.constant 0 : index
    %9 = vector.load %arg4[%c0_6, %c0_7] : memref<64x18xbf16, #tpu.memory_space<vmem>>, vector<64x18xbf16>
    tpu.vector_store %arg4[%c0_6, %c0_7], %8 {strides = array<i32>} : memref<64x18xbf16, #tpu.memory_space<vmem>>, vector<64x18xbf16>,
    return
  }
  func.func @transform_0(%arg0: i32) -> (i32, i32) {
    %c0_i32 = arith.constant 0 : i32
    %c0_i32_0 = arith.constant 0 : i32
    %c0_i32_1 = arith.constant 0 : i32
    return %c0_i32, %c0_i32_0 : i32, i32
  }
  func.func @transform_1(%arg0: i32) -> (i32, i32) {
    %c0_i32 = arith.constant 0 : i32
    %c0_i32_0 = arith.constant 0 : i32
    return %c0_i32, %arg0 : i32, i32
  }
  func.func @transform_2(%arg0: i32) -> (i32, i32) {
    %c0_i32 = arith.constant 0 : i32
    %c0_i32_0 = arith.constant 0 : i32
    %c0_i32_1 = arith.constant 0 : i32
    return %c0_i32, %c0_i32_0 : i32, i32
  }
  func.func @transform_3(%arg0: i32) -> (i32, i32) {
    %c0_i32 = arith.constant 0 : i32
    %c0_i32_0 = arith.constant 0 : i32
    return %c0_i32, %arg0 : i32, i32
  }
}

module attributes {stable_mosaic.version = 11 : i64} {
  func.func @_matmul_bias_kernel(%arg0: i32, %arg1: memref<64x576xbf16, #tpu.memory_space<vmem>>, %arg2: memref<576x2xbf16, #tpu.memory_space<vmem>>, %arg3: memref<64x1xf32, #tpu.memory_space<vmem>>, %arg4: memref<64x2xbf16, #tpu.memory_space<vmem>>) attributes {dimension_semantics = [#tpu.dimension_semantics<parallel>], iteration_bounds = array<i64: 1>, scalar_prefetch = 0 : i64, scratch_operands = 0 : i64, tpu.core_type = #tpu.core_type<tc>, window_params = [{pipeline_mode = #tpu.pipeline_mode<synchronous>, transform_indices = @transform_0, window_bounds = array<i64: 64, 576>}, {transform_indices = @transform_1, window_bounds = array<i64: 576, 2>}, {pipeline_mode = #tpu.pipeline_mode<synchronous>, transform_indices = @transform_2, window_bounds = array<i64: 64, 1>}, {transform_indices = @transform_3, window_bounds = array<i64: 64, 2>}]} {
    %c0 = arith.constant 0 : index
    %c0_0 = arith.constant 0 : index
    %0 = vector.load %arg1[%c0, %c0_0] : memref<64x576xbf16, #tpu.memory_space<vmem>>, vector<64x576xbf16>
    %c0_1 = arith.constant 0 : index
    %c0_2 = arith.constant 0 : index
    %1 = vector.load %arg2[%c0_1, %c0_2] : memref<576x2xbf16, #tpu.memory_space<vmem>>, vector<576x2xbf16>
    %cst = arith.constant dense<0.000000e+00> : vector<64x2xf32>
    %2 = tpu.matmul %0, %1, %cst {dimension_numbers = #tpu.dot_dimension_numbers<[1], [0], [0], [1], [0, 0, 1, 1], [], []>} : vector<64x576xbf16>, vector<576x2xbf16>, vector<64x2xf32> -> vector<64x2xf32>
    %c0_3 = arith.constant 0 : index
    %c0_4 = arith.constant 0 : index
    %3 = vector.load %arg3[%c0_3, %c0_4] : memref<64x1xf32, #tpu.memory_space<vmem>>, vector<64x1xf32>
    %4 = vector.broadcast %3 : vector<64x1xf32> to vector<64x2xf32>
    %5 = arith.addf %2, %4 : vector<64x2xf32>
    %cst_5 = arith.constant 0.000000e+00 : f32
    %6 = vector.broadcast %cst_5 : f32 to vector<64x2xf32>
    %7 = arith.maximumf %5, %6 : vector<64x2xf32>
    %8 = arith.truncf %7 : vector<64x2xf32> to vector<64x2xbf16>
    %c0_6 = arith.constant 0 : index
    %c0_7 = arith.constant 0 : index
    %9 = vector.load %arg4[%c0_6, %c0_7] : memref<64x2xbf16, #tpu.memory_space<vmem>>, vector<64x2xbf16>
    tpu.vector_store %arg4[%c0_6, %c0_7], %8 {strides = array<i32>} : memref<64x2xbf16, #tpu.memory_space<vmem>>, vector<64x2xbf16>,
    return
  }
  func.func @transform_0(%arg0: i32) -> (i32, i32) {
    %c0_i32 = arith.constant 0 : i32
    %c0_i32_0 = arith.constant 0 : i32
    %c0_i32_1 = arith.constant 0 : i32
    return %c0_i32, %c0_i32_0 : i32, i32
  }
  func.func @transform_1(%arg0: i32) -> (i32, i32) {
    %c0_i32 = arith.constant 0 : i32
    %c0_i32_0 = arith.constant 0 : i32
    return %c0_i32, %arg0 : i32, i32
  }
  func.func @transform_2(%arg0: i32) -> (i32, i32) {
    %c0_i32 = arith.constant 0 : i32
    %c0_i32_0 = arith.constant 0 : i32
    %c0_i32_1 = arith.constant 0 : i32
    return %c0_i32, %c0_i32_0 : i32, i32
  }
  func.func @transform_3(%arg0: i32) -> (i32, i32) {
    %c0_i32 = arith.constant 0 : i32
    %c0_i32_0 = arith.constant 0 : i32
    return %c0_i32, %arg0 : i32, i32
  }
}

module attributes {stable_mosaic.version = 11 : i64} {
  func.func @_matmul_bias_kernel(%arg0: i32, %arg1: memref<32x64xbf16, #tpu.memory_space<vmem>>, %arg2: memref<64x2xbf16, #tpu.memory_space<vmem>>, %arg3: memref<32x1xf32, #tpu.memory_space<vmem>>, %arg4: memref<32x2xf32, #tpu.memory_space<vmem>>) attributes {dimension_semantics = [#tpu.dimension_semantics<parallel>], iteration_bounds = array<i64: 1>, scalar_prefetch = 0 : i64, scratch_operands = 0 : i64, tpu.core_type = #tpu.core_type<tc>, window_params = [{pipeline_mode = #tpu.pipeline_mode<synchronous>, transform_indices = @transform_0, window_bounds = array<i64: 32, 64>}, {transform_indices = @transform_1, window_bounds = array<i64: 64, 2>}, {pipeline_mode = #tpu.pipeline_mode<synchronous>, transform_indices = @transform_2, window_bounds = array<i64: 32, 1>}, {transform_indices = @transform_3, window_bounds = array<i64: 32, 2>}]} {
    %c0 = arith.constant 0 : index
    %c0_0 = arith.constant 0 : index
    %0 = vector.load %arg1[%c0, %c0_0] : memref<32x64xbf16, #tpu.memory_space<vmem>>, vector<32x64xbf16>
    %c0_1 = arith.constant 0 : index
    %c0_2 = arith.constant 0 : index
    %1 = vector.load %arg2[%c0_1, %c0_2] : memref<64x2xbf16, #tpu.memory_space<vmem>>, vector<64x2xbf16>
    %cst = arith.constant dense<0.000000e+00> : vector<32x2xf32>
    %2 = tpu.matmul %0, %1, %cst {dimension_numbers = #tpu.dot_dimension_numbers<[1], [0], [0], [1], [0, 0, 1, 1], [], []>} : vector<32x64xbf16>, vector<64x2xbf16>, vector<32x2xf32> -> vector<32x2xf32>
    %c0_3 = arith.constant 0 : index
    %c0_4 = arith.constant 0 : index
    %3 = vector.load %arg3[%c0_3, %c0_4] : memref<32x1xf32, #tpu.memory_space<vmem>>, vector<32x1xf32>
    %4 = vector.broadcast %3 : vector<32x1xf32> to vector<32x2xf32>
    %5 = arith.addf %2, %4 : vector<32x2xf32>
    %c0_5 = arith.constant 0 : index
    %c0_6 = arith.constant 0 : index
    %6 = vector.load %arg4[%c0_5, %c0_6] : memref<32x2xf32, #tpu.memory_space<vmem>>, vector<32x2xf32>
    tpu.vector_store %arg4[%c0_5, %c0_6], %5 {strides = array<i32>} : memref<32x2xf32, #tpu.memory_space<vmem>>, vector<32x2xf32>,
    return
  }
  func.func @transform_0(%arg0: i32) -> (i32, i32) {
    %c0_i32 = arith.constant 0 : i32
    %c0_i32_0 = arith.constant 0 : i32
    %c0_i32_1 = arith.constant 0 : i32
    return %c0_i32, %c0_i32_0 : i32, i32
  }
  func.func @transform_1(%arg0: i32) -> (i32, i32) {
    %c0_i32 = arith.constant 0 : i32
    %c0_i32_0 = arith.constant 0 : i32
    return %c0_i32, %arg0 : i32, i32
  }
  func.func @transform_2(%arg0: i32) -> (i32, i32) {
    %c0_i32 = arith.constant 0 : i32
    %c0_i32_0 = arith.constant 0 : i32
    %c0_i32_1 = arith.constant 0 : i32
    return %c0_i32, %c0_i32_0 : i32, i32
  }
  func.func @transform_3(%arg0: i32) -> (i32, i32) {
    %c0_i32 = arith.constant 0 : i32
    %c0_i32_0 = arith.constant 0 : i32
    return %c0_i32, %arg0 : i32, i32
  }
}

</mosaic_0001>

<bundles_post_ra>
// kernel: encoder_forward.4
= control target key start
LH: loop header
LB: loop body
LE: loop exit
PB: predicated region body
PF: predicated region fallthrough
CT: control target
= control target key end

     0   :  { %v374_v4 = vmov 0   ;;  %s485_s1 = inlined_call_operand.vmem [shape: bf16[256,128], index: 1, kind: input, shape index: {}]   ;;  %s486_s2 = inlined_call_operand.vmem [shape: f32[32,1], index: 2, kind: input, shape index: {}]   ;;  %s487_s0 = inlined_call_operand.vmem [shape: bf16[32,256], index: 0, kind: input, shape index: {}]   ;;  %s488_s3 = inlined_call_operand.vmem [shape: bf16[32,128], index: 3, kind: output, shape index: {}]  }
   0x1   :  { %v335_v0 = vld [vmem:[%s485_s1 + $0x38] sm:$0xff]  ;;  %v334_v2 = vld [vmem:[%s485_s1 + $0x30] sm:$0xff]  ;;  %373 = vset.pattern.permute.xlu1 %v374_v4  ;;  %372 = vset.pattern.permute.xlu0 %v374_v4  ;;  %v333_v5 = vld [vmem:[%s485_s1 + $0x28] sm:$0xff] }
   0x2   :  { %v343_v1 = vld [vmem:[%s485_s1 + $0x78] sm:$0xff]  ;;  %190 = vmatpush.bf16.msra.mxu0 %v335_v0  ;;  %355 = vmatpush.bf16.msra.mxu2 %v335_v0  ;;  %v342_v3 = vld [vmem:[%s485_s1 + $0x70] sm:$0xff]  ;;  %v341_v6 = vld [vmem:[%s485_s1 + $0x68] sm:$0xff] }
   0x3   :  { %209 = vmatpush.bf16.msra.mxu1 %v343_v1  ;;  %363 = vmatpush.bf16.msra.mxu3 %v343_v1  ;;  %v52_v7 = vld [vmem:[%s486_s2 + $0x10] sm:$0xff]  ;;  %v50_v8 = vld [vmem:[%s486_s2] sm:$0xff]  ;;  %v331_v11 = vld [vmem:[%s485_s1 + $0x18] sm:$0xff] }
   0x4   :  { %66 = vperm.xlu1 %373, %v52_v7   ;;  %56 = vperm.xlu0 %372, %v50_v8   ;;  %v332_v9 = vld [vmem:[%s485_s1 + $0x20] sm:$0xff]  ;;  %v53_v12 = vld [vmem:[%s486_s2 + $0x18] sm:$0xff]  ;;  %v51_v13 = vld [vmem:[%s486_s2 + $0x8] sm:$0xff] }
   0x5   :  { %v340_v10 = vld [vmem:[%s485_s1 + $0x60] sm:$0xff]  ;;  %v339_v14 = vld [vmem:[%s485_s1 + $0x58] sm:$0xff]  ;;  %v330_v15 = vld [vmem:[%s485_s1 + $0x10] sm:$0xff] }
   0x6   :  { %191 = vmatpush.bf16.msra.mxu0 %v334_v2  ;;  %356 = vmatpush.bf16.msra.mxu2 %v334_v2  ;;  %v338_v16 = vld [vmem:[%s485_s1 + $0x50] sm:$0xff]  ;;  %v329_v17 = vld [vmem:[%s485_s1 + $0x8] sm:$0xff]  ;;  %v328_v19 = vld [vmem:[%s485_s1] sm:$0xff] }
   0x7   :  { %210 = vmatpush.bf16.msra.mxu1 %v342_v3  ;;  %364 = vmatpush.bf16.msra.mxu3 %v342_v3  ;;  %v337_v18 = vld [vmem:[%s485_s1 + $0x48] sm:$0xff]  ;;  %v336_v20 = vld [vmem:[%s485_s1 + $0x40] sm:$0xff]  ;;  %v254_v23 = vld [vmem:[%s487_s0 + $0x10] sm:$0xf] }
   0x8   :  { %v246_v21 = vld [vmem:[%s487_s0] sm:$0xf]  ;;  %v325_v22 = vld [vmem:[%s487_s0 + $0x4] sm:$0xf0]  ;;  %v327_v24 = vld [vmem:[%s487_s0 + $0x14] sm:$0xf0] }
   0x9   :  { %v324_v25 = vld [vmem:[%s487_s0 + $0x4] sm:$0xf]  ;;  %v248_v26 = vld [vmem:[%s487_s0 + $0x8] sm:$0xf0]  ;;  %v326_v27 = vld [vmem:[%s487_s0 + $0x14] sm:$0xf]  ;;  %v247_v29 = vor.u32 %v325_v22, %v246_v21  ;;  %v255_v30 = vor.u32 %v327_v24, %v254_v23 }
   0xa   :  { %192 = vmatpush.bf16.msra.mxu0 %v333_v5  ;;  %357 = vmatpush.bf16.msra.mxu2 %v333_v5  ;;  %v256_v28 = vld [vmem:[%s487_s0 + $0x18] sm:$0xf0]  ;;  %v251_v31 = vor.u32 %v324_v25, %v248_v26 }
   0xb   :  { %211 = vmatpush.bf16.msra.mxu1 %v341_v6  ;;  %365 = vmatpush.bf16.msra.mxu3 %v341_v6  ;;  %v259_v32 = vor.u32 %v326_v27, %v256_v28 }
   0xc   :  { %71 = vperm.xlu1 %373, %v53_v12   ;;  %61 = vperm.xlu0 %372, %v51_v13  }
   0xe   :  { %193 = vmatpush.bf16.msra.mxu0 %v332_v9  ;;  %358 = vmatpush.bf16.msra.mxu2 %v332_v9 }
   0xf   :  { %212 = vmatpush.bf16.msra.mxu1 %v340_v10  ;;  %366 = vmatpush.bf16.msra.mxu3 %v340_v10 }
  0x12   :  { %194 = vmatpush.bf16.msra.mxu0 %v331_v11  ;;  %359 = vmatpush.bf16.msra.mxu2 %v331_v11 }
  0x13   :  { %213 = vmatpush.bf16.msra.mxu1 %v339_v14  ;;  %367 = vmatpush.bf16.msra.mxu3 %v339_v14 }
  0x16   :  { %195 = vmatpush.bf16.msra.mxu0 %v330_v15  ;;  %360 = vmatpush.bf16.msra.mxu2 %v330_v15 }
  0x17   :  { %214 = vmatpush.bf16.msra.mxu1 %v338_v16  ;;  %368 = vmatpush.bf16.msra.mxu3 %v338_v16 }
  0x1a   :  { %196 = vmatpush.bf16.msra.mxu0 %v329_v17  ;;  %361 = vmatpush.bf16.msra.mxu2 %v329_v17 }
  0x1b   :  { %215 = vmatpush.bf16.msra.mxu1 %v337_v18  ;;  %369 = vmatpush.bf16.msra.mxu3 %v337_v18 }
  0x1e   :  { %197 = vmatpush.bf16.msra.mxu0 %v328_v19  ;;  %362 = vmatpush.bf16.msra.mxu2 %v328_v19 }
  0x1f   :  { %216 = vmatpush.bf16.msra.mxu1 %v336_v20  ;;  %370 = vmatpush.bf16.msra.mxu3 %v336_v20 }
  0x21   :  { %198 = vmatmul.bf16.vlgmr.msra.gmra.mxu0 %v247_v29  ;;  %203 = vmatmul.bf16.vlgmr.msra.gmra.mxu2 %v255_v30 }
  0x22   :  { %217 = vmatmul.bf16.vlgmr.msra.gmra.mxu1 %v251_v31  ;;  %222 = vmatmul.bf16.vlgmr.msra.gmra.mxu3 %v259_v32 }
  0x76   :  { %v57_v33 = vpop.permute.xlu0 %56  ;;  %v67_v36 = vpop.permute.xlu1 %66 }
  0x7e   :  { %v62_v40 = vpop.permute.xlu0 %61  ;;  %v72_v49 = vpop.permute.xlu1 %71 }
  0x9e   :  { %v199_v34 = vpop.f32.mrf.mxu0 }
  0x9f   :  { %v218_v35 = vpop.f32.mrf.mxu1  ;;  %v200_v37 = vadd.f32 %v199_v34, %v57_v33 }
  0xa1   :  { %v219_v42 = vadd.f32 %v218_v35, %v200_v37 }
  0xa3   :  { %v228_v47 = vmax.f32 %v219_v42, 0.0 }
  0xa4   :  { %v204_v38 = vpop.f32.mrf.mxu2 }
  0xa5   :  { %v223_v39 = vpop.f32.mrf.mxu3  ;;  %v205_v45 = vadd.f32 %v204_v38, %v67_v36 }
  0xa6   :  { %v201_v41 = vpop.f32.mrf.mxu0 }
  0xa7   :  { %v202_v43 = vadd.f32 %v201_v41, %v62_v40  ;;  %v220_v44 = vpop.f32.mrf.mxu1  ;;  %v224_v51 = vadd.f32 %v223_v39, %v205_v45 }
  0xa9   :  { %v221_v46 = vadd.f32 %v220_v44, %v202_v43  ;;  %v230_v56 = vmax.f32 %v224_v51, 0.0 }
  0xab   :  { %v229_v48 = vmax.f32 %v221_v46, 0.0 }
  0xac   :  { %v206_v50 = vpop.f32.mrf.mxu2 }
  0xad   :  { %v347_v52 = vpack.c.bf16 %v229_v48, %v228_v47  ;;  %v207_v53 = vadd.f32 %v206_v50, %v72_v49  ;;  %v225_v54 = vpop.f32.mrf.mxu3 }
  0xaf   :  { %348 = vst [vmem:[%s488_s3] sm:$0xff] %v347_v52   ;;  %v226_v55 = vadd.f32 %v225_v54, %v207_v53 }
  0xb1   :  { %v231_v57 = vmax.f32 %v226_v55, 0.0 }
  0xb3   :  { %v352_v58 = vpack.c.bf16 %v231_v57, %v230_v56 }
  0xb5   :  { %354 = vst [vmem:[%s488_s3 + $0x8] sm:$0xff] %v352_v58  }

// kernel: encoder_forward.5
= control target key start
LH: loop header
LB: loop body
LE: loop exit
PB: predicated region body
PF: predicated region fallthrough
CT: control target
= control target key end

     0   :  { %v803_v8 = vmov 0   ;;  %vm546_vm0 = vcmask 142336   ;;  %s1072_s1 = inlined_call_operand.vmem [shape: bf16[512,18], index: 1, kind: input, shape index: {}]   ;;  %s1073_s2 = inlined_call_operand.vmem [shape: f32[64,1], index: 2, kind: input, shape index: {}]   ;;  %s1074_s0 = inlined_call_operand.vmem [shape: bf16[64,512], index: 0, kind: input, shape index: {}]   ;;  %s1075_s3 = inlined_call_operand.vmem [shape: bf16[64,18], index: 3, kind: output, shape index: {}]  }
   0x1   :  { %v774_v0 = vld [vmem:[%s1072_s1 + $0x38] sm:$0xff]  ;;  %v773_v4 = vld [vmem:[%s1072_s1 + $0x30] sm:$0xff]  ;;  %800 = vset.pattern.permute.xlu0 %v803_v8  ;;  %801 = vset.pattern.permute.xlu1 %v803_v8  ;;  %v772_v9 = vld [vmem:[%s1072_s1 + $0x28] sm:$0xff] }
   0x2   :  { %v782_v1 = vld [vmem:[%s1072_s1 + $0x78] sm:$0xff]  ;;  %414 = vmatpush.bf16.msra.mxu0 %v774_v0  ;;  %v781_v5 = vld [vmem:[%s1072_s1 + $0x70] sm:$0xff]  ;;  %802 = vset.pattern.permute.xlu2 %v803_v8  ;;  %v780_v10 = vld [vmem:[%s1072_s1 + $0x68] sm:$0xff] }
   0x3   :  { %v790_v2 = vld [vmem:[%s1072_s1 + $0xb8] sm:$0xff]  ;;  %443 = vmatpush.bf16.msra.mxu1 %v782_v1  ;;  %v789_v6 = vld [vmem:[%s1072_s1 + $0xb0] sm:$0xff]  ;;  %v788_v11 = vld [vmem:[%s1072_s1 + $0xa8] sm:$0xff] }
   0x4   :  { %v798_v3 = vld [vmem:[%s1072_s1 + $0xf8] sm:$0xff]  ;;  %472 = vmatpush.bf16.msra.mxu2 %v790_v2  ;;  %v797_v7 = vld [vmem:[%s1072_s1 + $0xf0] sm:$0xff]  ;;  %v796_v12 = vld [vmem:[%s1072_s1 + $0xe8] sm:$0xff] }
   0x5   :  { %501 = vmatpush.bf16.msra.mxu3 %v798_v3  ;;  %v771_v13 = vld [vmem:[%s1072_s1 + $0x20] sm:$0xff]  ;;  %v770_v18 = vld [vmem:[%s1072_s1 + $0x18] sm:$0xff]  ;;  %v769_v22 = vld [vmem:[%s1072_s1 + $0x10] sm:$0xff] }
   0x6   :  { %415 = vmatpush.bf16.msra.mxu0 %v773_v4  ;;  %v779_v14 = vld [vmem:[%s1072_s1 + $0x60] sm:$0xff]  ;;  %v778_v19 = vld [vmem:[%s1072_s1 + $0x58] sm:$0xff]  ;;  %v777_v23 = vld [vmem:[%s1072_s1 + $0x50] sm:$0xff] }
   0x7   :  { %444 = vmatpush.bf16.msra.mxu1 %v781_v5  ;;  %v787_v15 = vld [vmem:[%s1072_s1 + $0xa0] sm:$0xff]  ;;  %v786_v20 = vld [vmem:[%s1072_s1 + $0x98] sm:$0xff]  ;;  %v96_v24 = vld [vmem:[%s1073_s2 + $0x10] sm:$0xff] }
   0x8   :  { %473 = vmatpush.bf16.msra.mxu2 %v789_v6  ;;  %v795_v16 = vld [vmem:[%s1072_s1 + $0xe0] sm:$0xff]  ;;  %v794_v21 = vld [vmem:[%s1072_s1 + $0xd8] sm:$0xff]  ;;  %v785_v25 = vld [vmem:[%s1072_s1 + $0x90] sm:$0xff]  ;;  %114 = vperm.xlu1 %801, %v96_v24  }
   0x9   :  { %502 = vmatpush.bf16.msra.mxu3 %v797_v7  ;;  %v94_v17 = vld [vmem:[%s1073_s2] sm:$0xff]  ;;  %v793_v26 = vld [vmem:[%s1072_s1 + $0xd0] sm:$0xff]  ;;  %v95_v27 = vld [vmem:[%s1073_s2 + $0x8] sm:$0xff] }
   0xa   :  { %416 = vmatpush.bf16.msra.mxu0 %v772_v9  ;;  %104 = vperm.xlu0 %800, %v94_v17   ;;  %v768_v28 = vld [vmem:[%s1072_s1 + $0x8] sm:$0xff]  ;;  %v767_v32 = vld [vmem:[%s1072_s1] sm:$0xff]  ;;  %v753_v37 = vld [vmem:[%s1074_s0 + $0xc] sm:$0xf0] }
   0xb   :  { %445 = vmatpush.bf16.msra.mxu1 %v780_v10  ;;  %v776_v29 = vld [vmem:[%s1072_s1 + $0x48] sm:$0xff]  ;;  %v775_v33 = vld [vmem:[%s1072_s1 + $0x40] sm:$0xff]  ;;  %v563_v39 = vld [vmem:[%s1074_s0 + $0x10] sm:$0xf0] }
   0xc   :  { %474 = vmatpush.bf16.msra.mxu2 %v788_v11  ;;  %v784_v30 = vld [vmem:[%s1072_s1 + $0x88] sm:$0xff]  ;;  %v783_v34 = vld [vmem:[%s1072_s1 + $0x80] sm:$0xff]  ;;  %v754_v41 = vld [vmem:[%s1074_s0 + $0x14] sm:$0xf0] }
   0xd   :  { %503 = vmatpush.bf16.msra.mxu3 %v796_v12  ;;  %v792_v31 = vld [vmem:[%s1072_s1 + $0xc8] sm:$0xff]  ;;  %v791_v35 = vld [vmem:[%s1072_s1 + $0xc0] sm:$0xff]  ;;  %v571_v43 = vld [vmem:[%s1074_s0 + $0x18] sm:$0xf0] }
   0xe   :  { %417 = vmatpush.bf16.msra.mxu0 %v771_v13  ;;  %v561_v36 = vld [vmem:[%s1074_s0] sm:$0xf]  ;;  %v751_v38 = vld [vmem:[%s1074_s0 + $0x4] sm:$0xf]  ;;  %v569_v40 = vld [vmem:[%s1074_s0 + $0x8] sm:$0xf] }
   0xf   :  { %446 = vmatpush.bf16.msra.mxu1 %v779_v14  ;;  %v752_v42 = vld [vmem:[%s1074_s0 + $0xc] sm:$0xf]  ;;  %v562_v44 = vor.u32 %v753_v37, %v561_v36  ;;  %v566_v45 = vor.u32 %v751_v38, %v563_v39  ;;  %v570_v46 = vor.u32 %v754_v41, %v569_v40  ;;  %v97_v48 = vld [vmem:[%s1073_s2 + $0x18] sm:$0xff]  ;;  %v577_v49 = vld [vmem:[%s1074_s0 + $0x20] sm:$0xf] }
  0x10   :  { %475 = vmatpush.bf16.msra.mxu2 %v787_v15  ;;  %v574_v47 = vor.u32 %v752_v42, %v571_v43  ;;  %119 = vperm.xlu1 %801, %v97_v48   ;;  %v757_v50 = vld [vmem:[%s1074_s0 + $0x2c] sm:$0xf0]  ;;  %v755_v51 = vld [vmem:[%s1074_s0 + $0x24] sm:$0xf]  ;;  %v579_v52 = vld [vmem:[%s1074_s0 + $0x30] sm:$0xf0] }
  0x11   :  { %504 = vmatpush.bf16.msra.mxu3 %v795_v16  ;;  %v585_v53 = vld [vmem:[%s1074_s0 + $0x28] sm:$0xf]  ;;  %v758_v54 = vld [vmem:[%s1074_s0 + $0x34] sm:$0xf0]  ;;  %v756_v55 = vld [vmem:[%s1074_s0 + $0x2c] sm:$0xf]  ;;  %v578_v57 = vor.u32 %v757_v50, %v577_v49  ;;  %v582_v58 = vor.u32 %v755_v51, %v579_v52 }
  0x12   :  { %418 = vmatpush.bf16.msra.mxu0 %v770_v18  ;;  %109 = vperm.xlu0 %800, %v95_v27   ;;  %v587_v56 = vld [vmem:[%s1074_s0 + $0x38] sm:$0xf0]  ;;  %v586_v59 = vor.u32 %v758_v54, %v585_v53  ;;  %v100_v62 = vld [vmem:[%s1073_s2 + $0x30] sm:$0xff]  ;;  %v98_v63 = vld [vmem:[%s1073_s2 + $0x20] sm:$0xff] }
  0x13   :  { %447 = vmatpush.bf16.msra.mxu1 %v778_v19  ;;  %v590_v60 = vor.u32 %v756_v55, %v587_v56  ;;  %v101_v61 = vld [vmem:[%s1073_s2 + $0x38] sm:$0xff]  ;;  %124 = vperm.xlu2 %802, %v98_v63   ;;  %v593_v0 = vld [vmem:[%s1074_s0 + $0x40] sm:$0xf]  ;;  %v761_v1 = vld [vmem:[%s1074_s0 + $0x4c] sm:$0xf0] }
  0x14   :  { %476 = vmatpush.bf16.msra.mxu2 %v786_v20  ;;  %v99_v2 = vld [vmem:[%s1073_s2 + $0x28] sm:$0xff]  ;;  %v759_v3 = vld [vmem:[%s1074_s0 + $0x44] sm:$0xf]  ;;  %v595_v4 = vld [vmem:[%s1074_s0 + $0x50] sm:$0xf0]  ;;  %v594_v9 = vor.u32 %v761_v1, %v593_v0 }
  0x15   :  { %505 = vmatpush.bf16.msra.mxu3 %v794_v21  ;;  %v601_v5 = vld [vmem:[%s1074_s0 + $0x48] sm:$0xf]  ;;  %v762_v6 = vld [vmem:[%s1074_s0 + $0x54] sm:$0xf0]  ;;  %v760_v7 = vld [vmem:[%s1074_s0 + $0x4c] sm:$0xf]  ;;  %v598_v10 = vor.u32 %v759_v3, %v595_v4 }
  0x16   :  { %419 = vmatpush.bf16.msra.mxu0 %v769_v22  ;;  %v603_v8 = vld [vmem:[%s1074_s0 + $0x58] sm:$0xf0]  ;;  %v602_v11 = vor.u32 %v762_v6, %v601_v5  ;;  %v609_v13 = vld [vmem:[%s1074_s0 + $0x60] sm:$0xf]  ;;  %v765_v14 = vld [vmem:[%s1074_s0 + $0x6c] sm:$0xf0] }
  0x17   :  { %448 = vmatpush.bf16.msra.mxu1 %v777_v23  ;;  %v606_v12 = vor.u32 %v760_v7, %v603_v8  ;;  %v763_v15 = vld [vmem:[%s1074_s0 + $0x64] sm:$0xf]  ;;  %v611_v16 = vld [vmem:[%s1074_s0 + $0x70] sm:$0xf0]  ;;  %v617_v17 = vld [vmem:[%s1074_s0 + $0x68] sm:$0xf]  ;;  %v610_v21 = vor.u32 %v765_v14, %v609_v13 }
  0x18   :  { %477 = vmatpush.bf16.msra.mxu2 %v785_v25  ;;  %139 = vperm.xlu1 %801, %v101_v61   ;;  %v766_v18 = vld [vmem:[%s1074_s0 + $0x74] sm:$0xf0]  ;;  %v764_v19 = vld [vmem:[%s1074_s0 + $0x6c] sm:$0xf]  ;;  %v619_v20 = vld [vmem:[%s1074_s0 + $0x78] sm:$0xf0]  ;;  %v614_v22 = vor.u32 %v763_v15, %v611_v16 }
  0x19   :  { %506 = vmatpush.bf16.msra.mxu3 %v793_v26  ;;  %v618_v23 = vor.u32 %v766_v18, %v617_v17  ;;  %v622_v24 = vor.u32 %v764_v19, %v619_v20 }
  0x1a   :  { %420 = vmatpush.bf16.msra.mxu0 %v768_v28  ;;  %134 = vperm.xlu0 %800, %v100_v62  }
  0x1b   :  { %449 = vmatpush.bf16.msra.mxu1 %v776_v29  ;;  %129 = vperm.xlu2 %802, %v99_v2  }
  0x1c   :  { %478 = vmatpush.bf16.msra.mxu2 %v784_v30 }
  0x1d   :  { %507 = vmatpush.bf16.msra.mxu3 %v792_v31 }
  0x1e   :  { %421 = vmatpush.bf16.msra.mxu0 %v767_v32 }
  0x1f   :  { %450 = vmatpush.bf16.msra.mxu1 %v775_v33 }
  0x20   :  { %479 = vmatpush.bf16.msra.mxu2 %v783_v34 }
  0x21   :  { %508 = vmatpush.bf16.msra.mxu3 %v791_v35  ;;  %422 = vmatmul.bf16.vlgmr.msra.gmra.mxu0 %v562_v44 }
  0x22   :  { %451 = vmatmul.bf16.vlgmr.msra.gmra.mxu1 %v566_v45 }
  0x23   :  { %480 = vmatmul.bf16.vlgmr.msra.gmra.mxu2 %v570_v46 }
  0x24   :  { %509 = vmatmul.bf16.vlgmr.msra.gmra.mxu3 %v574_v47 }
  0x31   :  { %427 = vmatmul.bf16.gmra.mxu0 %v578_v57 }
  0x32   :  { %456 = vmatmul.bf16.gmra.mxu1 %v582_v58 }
  0x33   :  { %485 = vmatmul.bf16.gmra.mxu2 %v586_v59 }
  0x34   :  { %514 = vmatmul.bf16.gmra.mxu3 %v590_v60 }
  0x41   :  { %432 = vmatmul.bf16.gmra.mxu0 %v594_v9 }
  0x42   :  { %461 = vmatmul.bf16.gmra.mxu1 %v598_v10 }
  0x43   :  { %490 = vmatmul.bf16.gmra.mxu2 %v602_v11 }
  0x44   :  { %519 = vmatmul.bf16.gmra.mxu3 %v606_v12 }
  0x51   :  { %437 = vmatmul.bf16.gmra.mxu0 %v610_v21 }
  0x52   :  { %466 = vmatmul.bf16.gmra.mxu1 %v614_v22 }
  0x53   :  { %495 = vmatmul.bf16.gmra.mxu2 %v618_v23 }
  0x54   :  { %524 = vmatmul.bf16.gmra.mxu3 %v622_v24 }
  0x6d   :  { %v125_v61 = vpop.permute.xlu2 %124 }
  0x75   :  { %v130_v10 = vpop.permute.xlu2 %129 }
  0x7a   :  { %v115_v39 = vpop.permute.xlu1 %114 }
  0x7c   :  { %v105_v25 = vpop.permute.xlu0 %104 }
  0x82   :  { %v120_v52 = vpop.permute.xlu1 %119 }
  0x84   :  { %v110_v30 = vpop.permute.xlu0 %109 }
  0x9e   :  { %v423_v26 = vpop.f32.mrf.mxu0 }
  0x9f   :  { %v452_v27 = vpop.f32.mrf.mxu1  ;;  %v424_v28 = vadd.f32 %v423_v26, %v105_v25  ;;  %v135_v25 = vpop.permute.xlu0 %134 }
  0xa1   :  { %v453_v29 = vadd.f32 %v452_v27, %v424_v28 }
  0xa6   :  { %v481_v31 = vpop.f32.mrf.mxu2  ;;  %v425_v34 = vpop.f32.mrf.mxu0 }
  0xa7   :  { %v510_v32 = vpop.f32.mrf.mxu3  ;;  %v482_v33 = vadd.f32 %v481_v31, %v453_v29  ;;  %v454_v35 = vpop.f32.mrf.mxu1  ;;  %v426_v37 = vadd.f32 %v425_v34, %v110_v30 }
  0xa9   :  { %v511_v36 = vadd.f32 %v510_v32, %v482_v33  ;;  %v455_v41 = vadd.f32 %v454_v35, %v426_v37 }
  0xab   :  { %v530_v38 = vmax.f32 %v511_v36, 0.0  ;;  %v140_v36 = vpop.permute.xlu1 %139 }
  0xad   :  { %v538_v40 = vpack.c.bf16 %v530_v38, %v530_v38 }
  0xae   :  { %v483_v42 = vpop.f32.mrf.mxu2  ;;  %v428_v45 = vpop.f32.mrf.mxu0 }
  0xaf   :  { %v512_v43 = vpop.f32.mrf.mxu3  ;;  %547 = vst.msk [vmem:[%s1075_s3] sm:$0xf] %vm546_vm0, %v538_v40  ;;  %v484_v44 = vadd.f32 %v483_v42, %v455_v41  ;;  %v457_v46 = vpop.f32.mrf.mxu1  ;;  %v429_v47 = vadd.f32 %v428_v45, %v115_v39 }
  0xb1   :  { %v513_v48 = vadd.f32 %v512_v43, %v484_v44  ;;  %v458_v50 = vadd.f32 %v457_v46, %v429_v47 }
  0xb3   :  { %v531_v49 = vmax.f32 %v513_v48, 0.0 }
  0xb5   :  { %v539_v51 = vpack.c.bf16 %v531_v49, %v531_v49 }
  0xb6   :  { %v486_v53 = vpop.f32.mrf.mxu2  ;;  %v430_v56 = vpop.f32.mrf.mxu0 }
  0xb7   :  { %v515_v54 = vpop.f32.mrf.mxu3  ;;  %548 = vst.msk [vmem:[%s1075_s3 + $0x4] sm:$0xf] %vm546_vm0, %v539_v51  ;;  %v487_v55 = vadd.f32 %v486_v53, %v458_v50  ;;  %v459_v57 = vpop.f32.mrf.mxu1  ;;  %v431_v59 = vadd.f32 %v430_v56, %v120_v52 }
  0xb9   :  { %v516_v58 = vadd.f32 %v515_v54, %v487_v55  ;;  %v460_v63 = vadd.f32 %v459_v57, %v431_v59 }
  0xbb   :  { %v532_v60 = vmax.f32 %v516_v58, 0.0 }
  0xbd   :  { %v540_v62 = vpack.c.bf16 %v532_v60, %v532_v60 }
  0xbe   :  { %v488_v0 = vpop.f32.mrf.mxu2  ;;  %v433_v3 = vpop.f32.mrf.mxu0 }
  0xbf   :  { %v517_v1 = vpop.f32.mrf.mxu3  ;;  %549 = vst.msk [vmem:[%s1075_s3 + $0x8] sm:$0xf] %vm546_vm0, %v540_v62  ;;  %v489_v2 = vadd.f32 %v488_v0, %v460_v63  ;;  %v462_v4 = vpop.f32.mrf.mxu1  ;;  %v434_v5 = vadd.f32 %v433_v3, %v125_v61 }
  0xc1   :  { %v518_v6 = vadd.f32 %v517_v1, %v489_v2  ;;  %v463_v8 = vadd.f32 %v462_v4, %v434_v5 }
  0xc3   :  { %v533_v7 = vmax.f32 %v518_v6, 0.0 }
  0xc5   :  { %v541_v9 = vpack.c.bf16 %v533_v7, %v533_v7 }
  0xc6   :  { %v491_v11 = vpop.f32.mrf.mxu2  ;;  %v435_v14 = vpop.f32.mrf.mxu0 }
  0xc7   :  { %v520_v12 = vpop.f32.mrf.mxu3  ;;  %550 = vst.msk [vmem:[%s1075_s3 + $0xc] sm:$0xf] %vm546_vm0, %v541_v9  ;;  %v492_v13 = vadd.f32 %v491_v11, %v463_v8  ;;  %v464_v15 = vpop.f32.mrf.mxu1  ;;  %v436_v17 = vadd.f32 %v435_v14, %v130_v10 }
  0xc9   :  { %v521_v16 = vadd.f32 %v520_v12, %v492_v13  ;;  %v465_v20 = vadd.f32 %v464_v15, %v436_v17 }
  0xcb   :  { %v534_v18 = vmax.f32 %v521_v16, 0.0 }
  0xcd   :  { %v542_v19 = vpack.c.bf16 %v534_v18, %v534_v18 }
  0xce   :  { %v493_v21 = vpop.f32.mrf.mxu2  ;;  %v438_v24 = vpop.f32.mrf.mxu0 }
  0xcf   :  { %v522_v22 = vpop.f32.mrf.mxu3  ;;  %551 = vst.msk [vmem:[%s1075_s3 + $0x10] sm:$0xf] %vm546_vm0, %v542_v19  ;;  %v494_v23 = vadd.f32 %v493_v21, %v465_v20  ;;  %v439_v27 = vadd.f32 %v438_v24, %v135_v25  ;;  %v467_v28 = vpop.f32.mrf.mxu1 }
  0xd1   :  { %v523_v26 = vadd.f32 %v522_v22, %v494_v23  ;;  %v468_v31 = vadd.f32 %v467_v28, %v439_v27 }
  0xd3   :  { %v535_v29 = vmax.f32 %v523_v26, 0.0 }
  0xd5   :  { %v543_v30 = vpack.c.bf16 %v535_v29, %v535_v29 }
  0xd6   :  { %v496_v32 = vpop.f32.mrf.mxu2  ;;  %v440_v35 = vpop.f32.mrf.mxu0 }
  0xd7   :  { %v525_v33 = vpop.f32.mrf.mxu3  ;;  %552 = vst.msk [vmem:[%s1075_s3 + $0x14] sm:$0xf] %vm546_vm0, %v543_v30  ;;  %v497_v34 = vadd.f32 %v496_v32, %v468_v31  ;;  %v441_v38 = vadd.f32 %v440_v35, %v140_v36  ;;  %v469_v40 = vpop.f32.mrf.mxu1 }
  0xd9   :  { %v526_v37 = vadd.f32 %v525_v33, %v497_v34  ;;  %v470_v42 = vadd.f32 %v469_v40, %v441_v38 }
  0xdb   :  { %v536_v39 = vmax.f32 %v526_v37, 0.0 }
  0xdd   :  { %v544_v41 = vpack.c.bf16 %v536_v39, %v536_v39 }
  0xde   :  { %v498_v43 = vpop.f32.mrf.mxu2 }
  0xdf   :  { %553 = vst.msk [vmem:[%s1075_s3 + $0x18] sm:$0xf] %vm546_vm0, %v544_v41  ;;  %v499_v44 = vadd.f32 %v498_v43, %v470_v42  ;;  %v527_v45 = vpop.f32.mrf.mxu3 }
  0xe1   :  { %v528_v46 = vadd.f32 %v527_v45, %v499_v44 }
  0xe3   :  { %v537_v47 = vmax.f32 %v528_v46, 0.0 }
  0xe5   :  { %v545_v48 = vpack.c.bf16 %v537_v47, %v537_v47 }
  0xe7   :  { %554 = vst.msk [vmem:[%s1075_s3 + $0x1c] sm:$0xf] %vm546_vm0, %v545_v48 }

// kernel: encoder_forward.6
= control target key start
LH: loop header
LB: loop body
LE: loop exit
PB: predicated region body
PF: predicated region fallthrough
CT: control target
= control target key end

     0   :  { %v966_v6 = vmov 0   ;;  %vm475_vm0 = vcmask 523264   ;;  %vm649_vm1 = vcmask 11264   ;;  %s1284_s1 = inlined_call_operand.vmem [shape: bf16[576,2], index: 1, kind: input, shape index: {}]   ;;  %s1285_s2 = inlined_call_operand.vmem [shape: f32[64,1], index: 2, kind: input, shape index: {}]   ;;  %s1286_s0 = inlined_call_operand.vmem [shape: bf16[64,576], index: 0, kind: input, shape index: {}]   ;;  %s1287_s3 = inlined_call_operand.vmem [shape: bf16[64,2], index: 3, kind: output, shape index: {}]  }
   0x1   :  { %v917_v0 = vld [vmem:[%s1284_s1 + $0x38] sm:$0xff]  ;;  %v916_v1 = vld [vmem:[%s1284_s1 + $0x30] sm:$0xff]  ;;  %v915_v4 = vld [vmem:[%s1284_s1 + $0x28] sm:$0xff]  ;;  %964 = vset.pattern.permute.xlu1 %v966_v6  ;;  %963 = vset.pattern.permute.xlu0 %v966_v6 }
   0x2   :  { %946 = vmatpush.bf16.msra.mxu1 %v917_v0  ;;  %947 = vmatpush.bf16.msra.mxu2 %v917_v0  ;;  %v941_v2 = vld [vmem:[%s1284_s1 + $0xf8] sm:$0xff]  ;;  %v940_v3 = vld [vmem:[%s1284_s1 + $0xf0] sm:$0xff]  ;;  %v939_v5 = vld [vmem:[%s1284_s1 + $0xe8] sm:$0xff] }
   0x3   :  { %488 = vmatpush.bf16.msra.mxu0 %v917_v0  ;;  %575 = vmatpush.bf16.msra.mxu3 %v941_v2  ;;  %v914_v7 = vld [vmem:[%s1284_s1 + $0x20] sm:$0xff]  ;;  %v113_v8 = vld [vmem:[%s1285_s2 + $0x10] sm:$0xff]  ;;  %v913_v11 = vld [vmem:[%s1284_s1 + $0x18] sm:$0xff] }
   0x4   :  { %965 = vset.pattern.permute.xlu2 %v966_v6  ;;  %v938_v9 = vld [vmem:[%s1284_s1 + $0xe0] sm:$0xff]  ;;  %131 = vperm.xlu1 %964, %v113_v8   ;;  %v937_v12 = vld [vmem:[%s1284_s1 + $0xd8] sm:$0xff]  ;;  %v912_v13 = vld [vmem:[%s1284_s1 + $0x10] sm:$0xff] }
   0x5   :  { %v111_v10 = vld [vmem:[%s1285_s2] sm:$0xff]  ;;  %v114_v14 = vld [vmem:[%s1285_s2 + $0x18] sm:$0xff]  ;;  %v936_v15 = vld [vmem:[%s1284_s1 + $0xd0] sm:$0xff] }
   0x6   :  { %948 = vmatpush.bf16.msra.mxu1 %v916_v1  ;;  %949 = vmatpush.bf16.msra.mxu2 %v916_v1  ;;  %v112_v16 = vld [vmem:[%s1285_s2 + $0x8] sm:$0xff]  ;;  %v910_v19 = vld [vmem:[%s1284_s1] sm:$0xff]  ;;  %v897_v21 = vld [vmem:[%s1286_s0 + $0x38] sm:$0xf0] }
   0x7   :  { %489 = vmatpush.bf16.msra.mxu0 %v916_v1  ;;  %576 = vmatpush.bf16.msra.mxu3 %v940_v3  ;;  %v911_v17 = vld [vmem:[%s1284_s1 + $0x8] sm:$0xff]  ;;  %v724_v22 = vld [vmem:[%s1286_s0 + $0x78] sm:$0xf]  ;;  %v664_v26 = vld [vmem:[%s1286_s0] sm:$0xf] }
   0x8   :  { %121 = vperm.xlu0 %963, %v111_v10   ;;  %v935_v18 = vld [vmem:[%s1284_s1 + $0xc8] sm:$0xff]  ;;  %v933_v24 = vld [vmem:[%s1284_s1 + $0xb8] sm:$0xff]  ;;  %v934_v27 = vld [vmem:[%s1284_s1 + $0xc0] sm:$0xff] }
   0x9   :  { %v684_v20 = vld [vmem:[%s1286_s0 + $0x28] sm:$0xf]  ;;  %v907_v23 = vld [vmem:[%s1286_s0 + $0x88] sm:$0xf0]  ;;  %v925_v25 = vld [vmem:[%s1284_s1 + $0x78] sm:$0xff] }
   0xa   :  { %950 = vmatpush.bf16.msra.mxu1 %v915_v4  ;;  %951 = vmatpush.bf16.msra.mxu2 %v915_v4  ;;  %v685_v28 = vor.u32 %v897_v21, %v684_v20  ;;  %v725_v29 = vor.u32 %v907_v23, %v724_v22  ;;  %v892_v30 = vld [vmem:[%s1286_s0 + $0x10] sm:$0xf0]  ;;  %v891_v31 = vld [vmem:[%s1286_s0 + $0xc] sm:$0xf]  ;;  %v674_v32 = vld [vmem:[%s1286_s0 + $0x1c] sm:$0xf0] }
   0xb   :  { %490 = vmatpush.bf16.msra.mxu0 %v915_v4  ;;  %577 = vmatpush.bf16.msra.mxu3 %v939_v5  ;;  %v945_v33 = vld [vmem:[%s1284_s1 + $0x118] sm:$0xff]  ;;  %v932_v34 = vld [vmem:[%s1284_s1 + $0xb0] sm:$0xff]  ;;  %v665_v37 = vor.u32 %v892_v30, %v664_v26  ;;  %v677_v38 = vor.u32 %v891_v31, %v674_v32  ;;  %v931_v41 = vld [vmem:[%s1284_s1 + $0xa8] sm:$0xff] }
   0xc   :  { %136 = vperm.xlu1 %964, %v114_v14   ;;  %v924_v35 = vld [vmem:[%s1284_s1 + $0x70] sm:$0xff]  ;;  %v118_v36 = vld [vmem:[%s1285_s2 + $0x38] sm:$0xff]  ;;  %v923_v42 = vld [vmem:[%s1284_s1 + $0x68] sm:$0xff] }
   0xd   :  { %v944_v39 = vld [vmem:[%s1284_s1 + $0x110] sm:$0xff]  ;;  %v943_v43 = vld [vmem:[%s1284_s1 + $0x108] sm:$0xff]  ;;  %v930_v44 = vld [vmem:[%s1284_s1 + $0xa0] sm:$0xff] }
   0xe   :  { %952 = vmatpush.bf16.msra.mxu1 %v914_v7  ;;  %953 = vmatpush.bf16.msra.mxu2 %v914_v7  ;;  %v117_v40 = vld [vmem:[%s1285_s2 + $0x30] sm:$0xff]  ;;  %v922_v45 = vld [vmem:[%s1284_s1 + $0x60] sm:$0xff]  ;;  %v929_v49 = vld [vmem:[%s1284_s1 + $0x98] sm:$0xff] }
   0xf   :  { %491 = vmatpush.bf16.msra.mxu0 %v914_v7  ;;  %578 = vmatpush.bf16.msra.mxu3 %v938_v9  ;;  %v704_v46 = vld [vmem:[%s1286_s0 + $0x50] sm:$0xf]  ;;  %v902_v47 = vld [vmem:[%s1286_s0 + $0x60] sm:$0xf0]  ;;  %v921_v50 = vld [vmem:[%s1284_s1 + $0x58] sm:$0xff] }
  0x10   :  { %126 = vperm.xlu0 %963, %v112_v16   ;;  %v942_v48 = vld [vmem:[%s1284_s1 + $0x100] sm:$0xff]  ;;  %v680_v51 = vld [vmem:[%s1286_s0 + $0x10] sm:$0xf]  ;;  %v705_v52 = vor.u32 %v902_v47, %v704_v46  ;;  %v896_v54 = vld [vmem:[%s1286_s0 + $0x34] sm:$0xf] }
  0x11   :  { %v894_v53 = vld [vmem:[%s1286_s0 + $0x20] sm:$0xf0]  ;;  %v694_v55 = vld [vmem:[%s1286_s0 + $0x44] sm:$0xf0]  ;;  %v928_v56 = vld [vmem:[%s1284_s1 + $0x90] sm:$0xff] }
  0x12   :  { %954 = vmatpush.bf16.msra.mxu1 %v913_v11  ;;  %955 = vmatpush.bf16.msra.mxu2 %v913_v11  ;;  %v920_v57 = vld [vmem:[%s1284_s1 + $0x50] sm:$0xff]  ;;  %v681_v58 = vor.u32 %v894_v53, %v680_v51  ;;  %v697_v59 = vor.u32 %v896_v54, %v694_v55  ;;  %v115_v60 = vld [vmem:[%s1285_s2 + $0x20] sm:$0xff]  ;;  %v927_v61 = vld [vmem:[%s1284_s1 + $0x88] sm:$0xff] }
  0x13   :  { %492 = vmatpush.bf16.msra.mxu0 %v913_v11  ;;  %579 = vmatpush.bf16.msra.mxu3 %v937_v12  ;;  %v919_v62 = vld [vmem:[%s1284_s1 + $0x48] sm:$0xff]  ;;  %v926_v63 = vld [vmem:[%s1284_s1 + $0x80] sm:$0xff]  ;;  %v893_v2 = vld [vmem:[%s1286_s0 + $0x18] sm:$0xf0] }
  0x14   :  { %156 = vperm.xlu1 %964, %v118_v36   ;;  %141 = vperm.xlu2 %965, %v115_v60   ;;  %v918_v0 = vld [vmem:[%s1284_s1 + $0x40] sm:$0xff]  ;;  %v672_v1 = vld [vmem:[%s1286_s0 + $0x8] sm:$0xf]  ;;  %v666_v6 = vld [vmem:[%s1286_s0 + $0x14] sm:$0xf0] }
  0x15   :  { %v116_v3 = vld [vmem:[%s1285_s2 + $0x28] sm:$0xff]  ;;  %v673_v4 = vor.u32 %v893_v2, %v672_v1  ;;  %v890_v5 = vld [vmem:[%s1286_s0 + $0x4] sm:$0xf]  ;;  %v700_v7 = vld [vmem:[%s1286_s0 + $0x38] sm:$0xf] }
  0x16   :  { %956 = vmatpush.bf16.msra.mxu1 %v912_v13  ;;  %957 = vmatpush.bf16.msra.mxu2 %v912_v13  ;;  %v669_v8 = vor.u32 %v890_v5, %v666_v6  ;;  %v899_v9 = vld [vmem:[%s1286_s0 + $0x48] sm:$0xf0]  ;;  %v901_v10 = vld [vmem:[%s1286_s0 + $0x5c] sm:$0xf]  ;;  %v714_v11 = vld [vmem:[%s1286_s0 + $0x6c] sm:$0xf0] }
  0x17   :  { %493 = vmatpush.bf16.msra.mxu0 %v912_v13  ;;  %580 = vmatpush.bf16.msra.mxu3 %v936_v15  ;;  %v701_v12 = vor.u32 %v899_v9, %v700_v7  ;;  %v717_v13 = vor.u32 %v901_v10, %v714_v11  ;;  %v692_v14 = vld [vmem:[%s1286_s0 + $0x30] sm:$0xf]  ;;  %v898_v15 = vld [vmem:[%s1286_s0 + $0x40] sm:$0xf0]  ;;  %v904_v21 = vld [vmem:[%s1286_s0 + $0x70] sm:$0xf0] }
  0x18   :  { %151 = vperm.xlu0 %963, %v117_v40   ;;  %v693_v16 = vor.u32 %v898_v15, %v692_v14  ;;  %v906_v22 = vld [vmem:[%s1286_s0 + $0x84] sm:$0xf]  ;;  %v734_v23 = vld [vmem:[%s1286_s0 + $0x94] sm:$0xf0]  ;;  %v706_v30 = vld [vmem:[%s1286_s0 + $0x64] sm:$0xf0] }
  0x19   :  { %v712_v26 = vld [vmem:[%s1286_s0 + $0x58] sm:$0xf]  ;;  %v740_v32 = vld [vmem:[%s1286_s0 + $0x88] sm:$0xf]  ;;  %v908_v36 = vld [vmem:[%s1286_s0 + $0x90] sm:$0xf0] }
  0x1a   :  { %958 = vmatpush.bf16.msra.mxu1 %v911_v17  ;;  %959 = vmatpush.bf16.msra.mxu2 %v911_v17 }
  0x1b   :  { %494 = vmatpush.bf16.msra.mxu0 %v911_v17  ;;  %581 = vmatpush.bf16.msra.mxu3 %v935_v18  ;;  %v895_v17 = vld [vmem:[%s1286_s0 + $0x2c] sm:$0xf]  ;;  %v686_v18 = vld [vmem:[%s1286_s0 + $0x3c] sm:$0xf0] }
  0x1c   :  { %146 = vperm.xlu2 %965, %v116_v3   ;;  %v689_v20 = vor.u32 %v895_v17, %v686_v18 }
  0x1e   :  { %960 = vmatpush.bf16.msra.mxu1 %v910_v19  ;;  %961 = vmatpush.bf16.msra.mxu2 %v910_v19 }
  0x1f   :  { %495 = vmatpush.bf16.msra.mxu0 %v910_v19  ;;  %582 = vmatpush.bf16.msra.mxu3 %v934_v27  ;;  %v720_v19 = vld [vmem:[%s1286_s0 + $0x60] sm:$0xf]  ;;  %v903_v27 = vld [vmem:[%s1286_s0 + $0x68] sm:$0xf0] }
  0x21   :  { %501 = vmatmul.bf16.vlgmr.msra.gmra.mxu1 %v685_v28  ;;  %511 = vmatmul.bf16.vlgmr.msra.gmra.mxu2 %v725_v29  ;;  %v713_v28 = vor.u32 %v903_v27, %v712_v26  ;;  %v900_v29 = vld [vmem:[%s1286_s0 + $0x54] sm:$0xf] }
  0x22   :  { %546 = vmatpush.bf16.msrb.mxu2 %v933_v24  ;;  %517 = vmatpush.bf16.msrb.mxu1 %v925_v25  ;;  %v721_v24 = vor.u32 %v904_v21, %v720_v19  ;;  %v737_v25 = vor.u32 %v906_v22, %v734_v23  ;;  %v709_v31 = vor.u32 %v900_v29, %v706_v30 }
  0x23   :  { %608 = vmatpush.bf16.msrb.mxu0 %v945_v33  ;;  %583 = vmatmul.bf16.vlgmr.msra.gmra.mxu3 %v677_v38  ;;  %v909_v33 = vld [vmem:[%s1286_s0 + $0x98] sm:$0xf0] }
  0x24   :  { %496 = vmatmul.bf16.vlgmr.msra.gmra.mxu0 %v665_v37  ;;  %v905_v38 = vld [vmem:[%s1286_s0 + $0x7c] sm:$0xf] }
  0x26   :  { %547 = vmatpush.bf16.msrb.mxu2 %v932_v34  ;;  %518 = vmatpush.bf16.msrb.mxu1 %v924_v35  ;;  %v741_v34 = vor.u32 %v909_v33, %v740_v32  ;;  %v732_v35 = vld [vmem:[%s1286_s0 + $0x80] sm:$0xf] }
  0x27   :  { %609 = vmatpush.bf16.msrb.mxu0 %v944_v39  ;;  %v733_v37 = vor.u32 %v908_v36, %v732_v35  ;;  %v726_v39 = vld [vmem:[%s1286_s0 + $0x8c] sm:$0xf0] }
  0x28   :  { %v729_v40 = vor.u32 %v905_v38, %v726_v39 }
  0x2a   :  { %548 = vmatpush.bf16.msrb.mxu2 %v931_v41  ;;  %519 = vmatpush.bf16.msrb.mxu1 %v923_v42 }
  0x2b   :  { %610 = vmatpush.bf16.msrb.mxu0 %v943_v43 }
  0x2e   :  { %549 = vmatpush.bf16.msrb.mxu2 %v930_v44  ;;  %520 = vmatpush.bf16.msrb.mxu1 %v922_v45 }
  0x2f   :  { %611 = vmatpush.bf16.msrb.mxu0 %v942_v48 }
  0x31   :  { %506 = vmatmul.bf16.gmra.mxu1 %v705_v52 }
  0x32   :  { %550 = vmatpush.bf16.msrb.mxu2 %v929_v49  ;;  %521 = vmatpush.bf16.msrb.mxu1 %v921_v50 }
  0x33   :  { %588 = vmatmul.bf16.gmra.mxu3 %v697_v59 }
  0x34   :  { %886 = vmatmul.msk.bf16.vlgmr.msrb.gmra.mxu0 %vm475_vm0, %v681_v58 }
  0x36   :  { %551 = vmatpush.bf16.msrb.mxu2 %v928_v56  ;;  %522 = vmatpush.bf16.msrb.mxu1 %v920_v57 }
  0x3a   :  { %552 = vmatpush.bf16.msrb.mxu2 %v927_v61  ;;  %523 = vmatpush.bf16.msrb.mxu1 %v919_v62 }
  0x3e   :  { %553 = vmatpush.bf16.msrb.mxu2 %v926_v63  ;;  %524 = vmatpush.bf16.msrb.mxu1 %v918_v0 }
  0x41   :  { %554 = vmatmul.bf16.vlgmr.msrb.gmra.mxu2 %v673_v4  ;;  %525 = vmatmul.bf16.vlgmr.msrb.gmra.mxu1 %v669_v8 }
  0x43   :  { %593 = vmatmul.bf16.gmra.mxu3 %v717_v13 }
  0x44   :  { %887 = vmatmul.msk.bf16.gmra.mxu0 %vm475_vm0, %v701_v12 }
  0x51   :  { %559 = vmatmul.bf16.gmra.mxu2 %v693_v16  ;;  %530 = vmatmul.bf16.gmra.mxu1 %v689_v20 }
  0x53   :  { %598 = vmatmul.bf16.gmra.mxu3 %v737_v25 }
  0x54   :  { %888 = vmatmul.msk.bf16.gmra.mxu0 %vm475_vm0, %v721_v24 }
  0x61   :  { %564 = vmatmul.bf16.gmra.mxu2 %v713_v28  ;;  %535 = vmatmul.bf16.gmra.mxu1 %v709_v31 }
  0x64   :  { %889 = vmatmul.msk.bf16.gmra.mxu0 %vm475_vm0, %v741_v34 }
  0x6e   :  { %v142_v25 = vpop.permute.xlu2 %141 }
  0x71   :  { %569 = vmatmul.bf16.gmra.mxu2 %v733_v37  ;;  %540 = vmatmul.bf16.gmra.mxu1 %v729_v40 }
  0x76   :  { %v132_v1 = vpop.permute.xlu1 %131  ;;  %v147_v39 = vpop.permute.xlu2 %146 }
  0x7a   :  { %v122_v51 = vpop.permute.xlu0 %121 }
  0x7e   :  { %v137_v15 = vpop.permute.xlu1 %136 }
  0x82   :  { %v127_v59 = vpop.permute.xlu0 %126 }
  0x9e   :  { %v502_v41 = vpop.f32.mrf.mxu1 }
  0x9f   :  { %v503_v9 = vadd.f32 %v502_v41, %v132_v1 }
  0xa1   :  { %v497_v42 = vpop.f32.mrf.mxu0 }
  0xa2   :  { %v498_v52 = vadd.f32 %v497_v42, %v122_v51 }
  0xa4   :  { %v1243_v46 = vpop.f32.mrf.mxu2 }
  0xa6   :  { %v504_v43 = vpop.f32.mrf.mxu1  ;;  %v584_v47 = vpop.f32.mrf.mxu3 }
  0xa7   :  { %v505_v20 = vadd.f32 %v504_v43, %v137_v15 }
  0xa9   :  { %v499_v44 = vpop.f32.mrf.mxu0 }
  0xaa   :  { %v500_v61 = vadd.f32 %v499_v44, %v127_v59 }
  0xac   :  { %v1247_v50 = vpop.f32.mrf.mxu2 }
  0xae   :  { %v507_v45 = vpop.f32.mrf.mxu1  ;;  %v586_v55 = vpop.f32.mrf.mxu3 }
  0xaf   :  { %v508_v31 = vadd.f32 %v507_v45, %v142_v25 }
  0xb1   :  { %v613_v49 = vpop.f32.mrf.mxu0 }
  0xb6   :  { %v1245_v48 = vpop.f32.mrf.mxu1  ;;  %v589_v4 = vpop.f32.mrf.mxu3 }
  0xb7   :  { %v510_v43 = vadd.f32 %v1245_v48, %v147_v39 }
  0xb9   :  { %v615_v57 = vpop.f32.mrf.mxu0 }
  0xbe   :  { %v526_v53 = vpop.f32.mrf.mxu1  ;;  %v591_v18 = vpop.f32.mrf.mxu3 }
  0xbf   :  { %v527_v54 = vadd.f32 %v526_v53, %v498_v52 }
  0xc1   :  { %v618_v7 = vpop.f32.mrf.mxu0 }
  0xc4   :  { %v555_v56 = vpop.f32.mrf.mxu2 }
  0xc5   :  { %v556_v58 = vadd.f32 %v555_v56, %v527_v54  ;;  %v152_v54 = vpop.permute.xlu0 %151 }
  0xc6   :  { %v528_v63 = vpop.f32.mrf.mxu1  ;;  %v594_v32 = vpop.f32.mrf.mxu3 }
  0xc7   :  { %v585_v60 = vadd.f32 %v584_v47, %v556_v58  ;;  %v529_v0 = vadd.f32 %v528_v63, %v500_v61  ;;  %v513_v58 = vadd.f32 %v1243_v46, %v152_v54 }
  0xc9   :  { %v614_v62 = vadd.f32 %v613_v49, %v585_v60  ;;  %v620_v21 = vpop.f32.mrf.mxu0 }
  0xcb   :  { %v633_v2 = vmax.f32 %v614_v62, 0.0 }
  0xcc   :  { %v557_v3 = vpop.f32.mrf.mxu2 }
  0xcd   :  { %v641_v5 = vpack.c.bf16 %v633_v2, %v633_v2  ;;  %v558_v6 = vadd.f32 %v557_v3, %v529_v0  ;;  %v157_v0 = vpop.permute.xlu1 %156 }
  0xce   :  { %v531_v11 = vpop.f32.mrf.mxu1  ;;  %v596_v47 = vpop.f32.mrf.mxu3 }
  0xcf   :  { %650 = vst.msk [vmem:[%s1287_s3] sm:$0xf] %vm649_vm1, %v641_v5  ;;  %v587_v8 = vadd.f32 %v586_v55, %v558_v6  ;;  %v532_v12 = vadd.f32 %v531_v11, %v503_v9  ;;  %v515_v5 = vadd.f32 %v1247_v50, %v157_v0 }
  0xd1   :  { %v616_v10 = vadd.f32 %v615_v57, %v587_v8  ;;  %v623_v35 = vpop.f32.mrf.mxu0 }
  0xd3   :  { %v634_v13 = vmax.f32 %v616_v10, 0.0 }
  0xd4   :  { %v560_v14 = vpop.f32.mrf.mxu2 }
  0xd5   :  { %v642_v16 = vpack.c.bf16 %v634_v13, %v634_v13  ;;  %v561_v17 = vadd.f32 %v560_v14, %v532_v12 }
  0xd6   :  { %v533_v23 = vpop.f32.mrf.mxu1  ;;  %v599_v62 = vpop.f32.mrf.mxu3 }
  0xd7   :  { %651 = vst.msk [vmem:[%s1287_s3 + $0x4] sm:$0xf] %vm649_vm1, %v642_v16  ;;  %v590_v19 = vadd.f32 %v589_v4, %v561_v17  ;;  %v534_v24 = vadd.f32 %v533_v23, %v505_v20 }
  0xd9   :  { %v619_v22 = vadd.f32 %v618_v7, %v590_v19  ;;  %v625_v52 = vpop.f32.mrf.mxu0 }
  0xdb   :  { %v635_v26 = vmax.f32 %v619_v22, 0.0 }
  0xdc   :  { %v562_v27 = vpop.f32.mrf.mxu2 }
  0xdd   :  { %v643_v28 = vpack.c.bf16 %v635_v26, %v635_v26  ;;  %v563_v29 = vadd.f32 %v562_v27, %v534_v24 }
  0xde   :  { %v536_v34 = vpop.f32.mrf.mxu1  ;;  %v601_v12 = vpop.f32.mrf.mxu3 }
  0xdf   :  { %652 = vst.msk [vmem:[%s1287_s3 + $0x8] sm:$0xf] %vm649_vm1, %v643_v28  ;;  %v592_v30 = vadd.f32 %v591_v18, %v563_v29  ;;  %v537_v36 = vadd.f32 %v536_v34, %v508_v31 }
  0xe1   :  { %v621_v33 = vadd.f32 %v620_v21, %v592_v30  ;;  %v628_v3 = vpop.f32.mrf.mxu0 }
  0xe3   :  { %v636_v37 = vmax.f32 %v621_v33, 0.0 }
  0xe4   :  { %v565_v38 = vpop.f32.mrf.mxu2 }
  0xe5   :  { %v644_v40 = vpack.c.bf16 %v636_v37, %v636_v37  ;;  %v566_v41 = vadd.f32 %v565_v38, %v537_v36 }
  0xe6   :  { %v538_v45 = vpop.f32.mrf.mxu1 }
  0xe7   :  { %653 = vst.msk [vmem:[%s1287_s3 + $0xc] sm:$0xf] %vm649_vm1, %v644_v40  ;;  %v595_v42 = vadd.f32 %v594_v32, %v566_v41  ;;  %v539_v49 = vadd.f32 %v538_v45, %v510_v43 }
  0xe9   :  { %v624_v44 = vadd.f32 %v623_v35, %v595_v42  ;;  %v630_v14 = vpop.f32.mrf.mxu0 }
  0xeb   :  { %v637_v51 = vmax.f32 %v624_v44, 0.0 }
  0xec   :  { %v567_v53 = vpop.f32.mrf.mxu2 }
  0xed   :  { %v645_v55 = vpack.c.bf16 %v637_v51, %v637_v51  ;;  %v568_v56 = vadd.f32 %v567_v53, %v539_v49 }
  0xee   :  { %v541_v48 = vpop.f32.mrf.mxu1 }
  0xef   :  { %654 = vst.msk [vmem:[%s1287_s3 + $0x10] sm:$0xf] %vm649_vm1, %v645_v55  ;;  %v597_v57 = vadd.f32 %v596_v47, %v568_v56  ;;  %v542_v60 = vadd.f32 %v541_v48, %v513_v58 }
  0xf1   :  { %v626_v59 = vadd.f32 %v625_v52, %v597_v57 }
  0xf3   :  { %v638_v61 = vmax.f32 %v626_v59, 0.0 }
  0xf4   :  { %v570_v63 = vpop.f32.mrf.mxu2 }
  0xf5   :  { %v646_v1 = vpack.c.bf16 %v638_v61, %v638_v61  ;;  %v571_v2 = vadd.f32 %v570_v63, %v542_v60 }
  0xf6   :  { %v543_v46 = vpop.f32.mrf.mxu1 }
  0xf7   :  { %655 = vst.msk [vmem:[%s1287_s3 + $0x14] sm:$0xf] %vm649_vm1, %v646_v1  ;;  %v600_v4 = vadd.f32 %v599_v62, %v571_v2  ;;  %v544_v7 = vadd.f32 %v543_v46, %v515_v5 }
  0xf9   :  { %v629_v6 = vadd.f32 %v628_v3, %v600_v4 }
  0xfb   :  { %v639_v8 = vmax.f32 %v629_v6, 0.0 }
  0xfc   :  { %v572_v9 = vpop.f32.mrf.mxu2 }
  0xfd   :  { %v647_v10 = vpack.c.bf16 %v639_v8, %v639_v8  ;;  %v573_v11 = vadd.f32 %v572_v9, %v544_v7 }
  0xff   :  { %656 = vst.msk [vmem:[%s1287_s3 + $0x18] sm:$0xf] %vm649_vm1, %v647_v10  ;;  %v602_v13 = vadd.f32 %v601_v12, %v573_v11 }
 0x101   :  { %v631_v15 = vadd.f32 %v630_v14, %v602_v13 }
 0x103   :  { %v640_v16 = vmax.f32 %v631_v15, 0.0 }
 0x105   :  { %v648_v17 = vpack.c.bf16 %v640_v16, %v640_v16 }
 0x107   :  { %657 = vst.msk [vmem:[%s1287_s3 + $0x1c] sm:$0xf] %vm649_vm1, %v648_v17 }

// kernel: encoder_forward.7
= control target key start
LH: loop header
LB: loop body
LE: loop exit
PB: predicated region body
PF: predicated region fallthrough
CT: control target
= control target key end

     0   :  { %v159_v1 = vmov 0   ;;  %vm85_vm0 = vcmask 523264   ;;  %vm111_vm1 = vcmask 15360   ;;  %s222_s1 = inlined_call_operand.vmem [shape: bf16[64,2], index: 1, kind: input, shape index: {}]   ;;  %s223_s2 = inlined_call_operand.vmem [shape: f32[32,1], index: 2, kind: input, shape index: {}]   ;;  %s224_s0 = inlined_call_operand.vmem [shape: bf16[32,64], index: 0, kind: input, shape index: {}]   ;;  %s225_s3 = inlined_call_operand.vmem [shape: f32[32,2], index: 3, kind: output, shape index: {}]  }
   0x1   :  { %v151_v0 = vld [vmem:[%s222_s1 + $0x18] sm:$0xff]  ;;  %158 = vset.pattern.permute.xlu1 %v159_v1  ;;  %157 = vset.pattern.permute.xlu0 %v159_v1  ;;  %v150_v2 = vld [vmem:[%s222_s1 + $0x10] sm:$0xff]  ;;  %v27_v4 = vld [vmem:[%s223_s2] sm:$0xff] }
   0x2   :  { %96 = vmatpush.bf16.msra.mxu0 %v151_v0  ;;  %152 = vmatpush.bf16.msra.mxu1 %v151_v0  ;;  %v29_v3 = vld [vmem:[%s223_s2 + $0x10] sm:$0xff]  ;;  %v149_v5 = vld [vmem:[%s222_s1 + $0x8] sm:$0xff]  ;;  %v30_v6 = vld [vmem:[%s223_s2 + $0x18] sm:$0xff] }
   0x3   :  { %43 = vperm.xlu1 %158, %v29_v3   ;;  %33 = vperm.xlu0 %157, %v27_v4   ;;  %v28_v7 = vld [vmem:[%s223_s2 + $0x8] sm:$0xff]  ;;  %v148_v8 = vld [vmem:[%s222_s1] sm:$0xff] }
   0x4   :  { %v146_v9 = vld [vmem:[%s224_s0] sm:$0xff]  ;;  %v147_v10 = vld [vmem:[%s224_s0 + $0x8] sm:$0xff] }
   0x6   :  { %97 = vmatpush.bf16.msra.mxu0 %v150_v2  ;;  %153 = vmatpush.bf16.msra.mxu1 %v150_v2 }
   0xa   :  { %98 = vmatpush.bf16.msra.mxu0 %v149_v5  ;;  %154 = vmatpush.bf16.msra.mxu1 %v149_v5 }
   0xb   :  { %48 = vperm.xlu1 %158, %v30_v6   ;;  %38 = vperm.xlu0 %157, %v28_v7  }
   0xe   :  { %99 = vmatpush.bf16.msra.mxu0 %v148_v8  ;;  %155 = vmatpush.bf16.msra.mxu1 %v148_v8 }
  0x11   :  { %144 = vmatmul.msk.bf16.vlgmr.msra.gmra.mxu0 %vm85_vm0, %v146_v9  ;;  %145 = vmatmul.msk.bf16.vlgmr.msra.gmra.mxu1 %vm85_vm0, %v147_v10 }
  0x75   :  { %v44_v11 = vpop.permute.xlu1 %43  ;;  %v34_v12 = vpop.permute.xlu0 %33 }
  0x7d   :  { %v49_v17 = vpop.permute.xlu1 %48  ;;  %v39_v18 = vpop.permute.xlu0 %38 }
  0x8e   :  { %v101_v13 = vpop.f32.mrf.mxu0  ;;  %v106_v14 = vpop.f32.mrf.mxu1 }
  0x8f   :  { %v102_v15 = vadd.f32 %v101_v13, %v34_v12  ;;  %v107_v16 = vadd.f32 %v106_v14, %v44_v11 }
  0x91   :  { %112 = vst.msk [vmem:[%s225_s3] sm:$0xff] %vm111_vm1, %v102_v15 }
  0x92   :  { %114 = vst.msk [vmem:[%s225_s3 + $0x10] sm:$0xff] %vm111_vm1, %v107_v16 }
  0x96   :  { %v103_v19 = vpop.f32.mrf.mxu0  ;;  %v108_v20 = vpop.f32.mrf.mxu1 }
  0x97   :  { %v104_v21 = vadd.f32 %v103_v19, %v39_v18  ;;  %v109_v22 = vadd.f32 %v108_v20, %v49_v17 }
  0x99   :  { %113 = vst.msk [vmem:[%s225_s3 + $0x8] sm:$0xff] %vm111_vm1, %v104_v21 }
  0x9a   :  { %115 = vst.msk [vmem:[%s225_s3 + $0x18] sm:$0xff] %vm111_vm1, %v109_v22 }

</bundles_post_ra>
